<compile_context>
chip_gen: v5e
topology: v5e:2x2
jax: 0.10.0
libtpu: 0.0.40
codegen_flags: <defaults>
</compile_context>

<pallas_src>
import jax
import jax.numpy as jnp
from jax.experimental import pallas as pl
from jax.experimental.pallas import tpu as pltpu

_LANE = 128  # vreg lane width (all generations)


def _round_up(x, m):
    return ((x + m - 1) // m) * m


def _vmem_capacity_bytes():
    try:
        return int(pltpu.get_tpu_info().vmem_capacity_bytes)
    except Exception:
        return 64 << 20  # conservative default (v7x per-TC VMEM)


# ----------------------------- kernel -------------------------------------- #

def encoder_kernel(x_ref, w1_ref, b1_ref, w2_ref, b2_ref, w3_ref, b3_ref, out_ref):
    w_dtype = w1_ref.dtype
    x = x_ref[...]

    # Layer 1: Linear + Tanh (MXU in weight dtype, f32 accumulate, f32 bias/tanh)
    h1 = jnp.tanh(
        jnp.dot(x.astype(w_dtype), w1_ref[...], preferred_element_type=jnp.float32)
        + b1_ref[...].astype(jnp.float32)
    )
    # Layer 2: Linear + Tanh
    h2 = jnp.tanh(
        jnp.dot(h1.astype(w_dtype), w2_ref[...], preferred_element_type=jnp.float32)
        + b2_ref[...].astype(jnp.float32)
    )
    # Layer 3: Linear (no activation). Single fused output store (no lane padding).
    out = (
        jnp.dot(h2.astype(w_dtype), w3_ref[...], preferred_element_type=jnp.float32)
        + b3_ref[...].astype(jnp.float32)
    )
    out_ref[...] = out.astype(out_ref.dtype)


# ----------------------------- params prep ---------------------------------- #

def prepare_params(params, *, compute_dtype=None):
    """One-time pad/cast of weights (hoisted out of the forward path).

    Only the hidden dim is padded to a lane multiple; input/output dims stay
    at their true sizes (the streamed tensors are never lane-padded).
    W stored as [in, out]; biases as [1, out].
    """
    w_dtype = (jnp.dtype(compute_dtype) if compute_dtype is not None
               else jnp.dtype(params["w1"].dtype))
    input_dim, hidden_dim = params["w1"].shape
    output_dim = params["w3"].shape[1]
    hid_p = _round_up(hidden_dim, _LANE)

    def padc(a, rows, cols, dtype):
        a = jnp.asarray(a)
        if a.ndim == 1:
            a = a.reshape(1, -1)
        return jnp.pad(a, ((0, rows - a.shape[0]), (0, cols - a.shape[1]))).astype(dtype)

    return dict(
        w1=padc(params["w1"], input_dim, hid_p, w_dtype),
        b1=padc(params["b1"], 1, hid_p, jnp.float32),
        w2=padc(params["w2"], hid_p, hid_p, w_dtype),
        b2=padc(params["b2"], 1, hid_p, jnp.float32),
        w3=padc(params["w3"], hid_p, output_dim, w_dtype),
        b3=padc(params["b3"], 1, output_dim, jnp.float32),
        input_dim=input_dim,
        hidden_dim=hidden_dim,
        hid_p=hid_p,
        output_dim=output_dim,
        w_dtype=w_dtype,
    )


# ----------------------------- tiling heuristic ------------------------------ #

def _choose_block_b(B, stream_row_bytes, scratch_row_bytes, resident_bytes, vmem_budget):
    """Big tiles first (per-step overhead ~0.35us); >=2 steps only when cheap."""
    B8 = _round_up(max(B, 1), 8)
    # double-buffered streamed tiles + single-buffered f32 intermediates per row
    row_bytes = 2 * stream_row_bytes + scratch_row_bytes
    blk = min(B8, 4096)
    # Shrink only if weights (counted once) + tiles would blow the VMEM budget.
    while blk > 8 and resident_bytes + blk * row_bytes > vmem_budget:
        blk = max(8, _round_up(blk // 2, 8))
    steps = pl.cdiv(B8, blk)
    if steps > 1:
        # Balance tiles to minimize batch padding.
        blk = max(8, _round_up(pl.cdiv(B8, steps), 8))
    elif blk * row_bytes >= (4 << 20):
        # Large single tile: split into 2 so both TensorCores (v7x) get work,
        # keeping each tile >= ~2 MiB.
        blk = max(8, _round_up(pl.cdiv(B8, 2), 8))
    return blk


# ----------------------------- wrapper -------------------------------------- #

def encoder_forward(x, params, *, latent_dim, block_b=None, compute_dtype=None,
                    out_dtype=None):
    """x: [B, input_dim]. params: raw dict (w1,b1,...) or prepare_params() output."""
    p = params if "hid_p" in params else prepare_params(params, compute_dtype=compute_dtype)

    B, input_dim = x.shape
    assert input_dim == p["input_dim"]
    hid_p = p["hid_p"]
    output_dim = p["output_dim"]
    assert output_dim == 2 * latent_dim
    w_dtype = jnp.dtype(p["w_dtype"])

    # Stream x in the compute dtype when that is narrower (halves the dominant read).
    x_dtype = w_dtype if w_dtype.itemsize < jnp.dtype(x.dtype).itemsize else jnp.dtype(x.dtype)
    out_dtype = jnp.dtype(out_dtype) if out_dtype is not None else jnp.dtype(x.dtype)

    w_isz = w_dtype.itemsize
    resident_bytes = ((input_dim * hid_p + hid_p * hid_p + hid_p * output_dim) * w_isz
                      + (2 * hid_p + output_dim) * 4)          # weights/biases, single-buffered
    stream_row_bytes = input_dim * x_dtype.itemsize + output_dim * out_dtype.itemsize
    scratch_row_bytes = 2 * hid_p * 4                            # f32 h1/h2 intermediates

    vmem_capacity = _vmem_capacity_bytes()
    vmem_budget = (vmem_capacity * 3) // 4                       # headroom below physical VMEM

    if block_b is None:
        block_b = _choose_block_b(B, stream_row_bytes, scratch_row_bytes,
                                  resident_bytes, vmem_budget)
    block_b = max(8, _round_up(block_b, 8))

    B_pad = _round_up(B, block_b)
    x_p = x.astype(x_dtype)
    if B_pad != B:
        x_p = jnp.pad(x_p, ((0, B_pad - B), (0, 0)))             # batch pad only, no lane pad

    grid = (B_pad // block_b,)
    vmem_limit = int(vmem_budget)

    def run(single_buffer_weights):
        if single_buffer_weights:
            def wspec(shape):
                return pl.BlockSpec(shape, lambda i: (0, 0), pipeline_mode=pl.Buffered(1))
        else:
            def wspec(shape):
                return pl.BlockSpec(shape, lambda i: (0, 0))
        return pl.pallas_call(
            encoder_kernel,
            out_shape=jax.ShapeDtypeStruct((B_pad, output_dim), out_dtype),
            grid_spec=pltpu.PrefetchScalarGridSpec(
                num_scalar_prefetch=0,
                grid=grid,
                in_specs=[
                    pl.BlockSpec((block_b, input_dim), lambda i: (i, 0)),  # x (true lane width)
                    wspec((input_dim, hid_p)),     # w1 (VMEM-resident)
                    wspec((1, hid_p)),             # b1
                    wspec((hid_p, hid_p)),         # w2 (VMEM-resident)
                    wspec((1, hid_p)),             # b2
                    wspec((hid_p, output_dim)),    # w3 (VMEM-resident)
                    wspec((1, output_dim)),        # b3
                ],
                out_specs=pl.BlockSpec((block_b, output_dim), lambda i: (i, 0)),
            ),
            compiler_params=pltpu.CompilerParams(
                dimension_semantics=("parallel",),
                vmem_limit_bytes=vmem_limit,
            ),
        )(x_p, p["w1"], p["b1"], p["w2"], p["b2"], p["w3"], p["b3"])

    try:
        out = run(single_buffer_weights=True)
    except Exception:
        # Fallback for JAX builds without pl.Buffered / pipeline_mode support.
        out = run(single_buffer_weights=False)

    # Free slices in the wrapper: strip batch padding and split mu / logsigma.
    mu_z = out[:B, :latent_dim]
    logsigma_z = out[:B, latent_dim:output_dim]
    return mu_z, logsigma_z


# ----------------------------- init / reference ----------------------------- #

def init_params(key, input_dim, hidden_dim, latent_dim, dtype=jnp.float32):
    """PyTorch nn.Linear-style init (uniform +-1/sqrt(fan_in)); W stored [in, out]."""
    output_dim = 2 * latent_dim
    ks = jax.random.split(key, 6)

    def lin(kw, kb, fan_in, fan_out):
        bound = 1.0 / jnp.sqrt(fan_in)
        w = jax.random.uniform(kw, (fan_in, fan_out), dtype, -bound, bound)
        b = jax.random.uniform(kb, (1, fan_out), dtype, -bound, bound)
        return w, b

    w1, b1 = lin(ks[0], ks[1], input_dim, hidden_dim)
    w2, b2 = lin(ks[2], ks[3], hidden_dim, hidden_dim)
    w3, b3 = lin(ks[4], ks[5], hidden_dim, output_dim)
    return dict(w1=w1, b1=b1, w2=w2, b2=b2, w3=w3, b3=b3)


def encoder_ref(x, params, latent_dim):
    """Pure-JAX reference (full-precision matmuls)."""
    hp = jax.lax.Precision.HIGHEST
    h1 = jnp.tanh(jnp.dot(x, params["w1"], precision=hp) + params["b1"])
    h2 = jnp.tanh(jnp.dot(h1, params["w2"], precision=hp) + params["b2"])
    out = jnp.dot(h2, params["w3"], precision=hp) + params["b3"]
    return out[:, :latent_dim], out[:, latent_dim:]


# ----------------------------- test ----------------------------------------- #

if __name__ == "__main__":
    # Small shapes consistent with the module: batch=8, input_dim=16,
    # hidden_dim=32, latent_dim=4 (output_dim = 8).
    B, input_dim, hidden_dim, latent_dim = 8, 16, 32, 4

    key = jax.random.PRNGKey(0)
    k_x, k_p, k_x2 = jax.random.split(key, 3)
    x = jax.random.normal(k_x, (B, input_dim), dtype=jnp.float32)
    params = init_params(k_p, input_dim, hidden_dim, latent_dim)

    # One-time weight pad/cast, hoisted out of the forward path.
    prepared_f32 = prepare_params(params)
    mu_ref, ls_ref = encoder_ref(x, params, latent_dim)

    # f32 path
    mu_z, logsigma_z = encoder_forward(x, prepared_f32, latent_dim=latent_dim)
    jax.block_until_ready((mu_z, logsigma_z))
    assert mu_z.shape == (B, latent_dim) and logsigma_z.shape == (B, latent_dim)
    assert jnp.allclose(mu_z, mu_ref, atol=1e-4, rtol=1e-4)
    assert jnp.allclose(logsigma_z, ls_ref, atol=1e-4, rtol=1e-4)

    # bf16 weights + bf16 streamed x + bf16 output (full-rate MXU, ~2x less HBM traffic).
    prepared_bf16 = prepare_params(params, compute_dtype=jnp.bfloat16)
    mu_bf, ls_bf = encoder_forward(x, prepared_bf16, latent_dim=latent_dim,
                                   out_dtype=jnp.bfloat16)
    jax.block_until_ready((mu_bf, ls_bf))
    assert jnp.allclose(mu_bf.astype(jnp.float32), mu_ref, atol=5e-2, rtol=5e-2)
    assert jnp.allclose(ls_bf.astype(jnp.float32), ls_ref, atol=5e-2, rtol=5e-2)

    # Larger, non-multiple-of-8 batch: single big tile path (batch padding only).
    B2 = 260
    x2 = jax.random.normal(k_x2, (B2, input_dim), dtype=jnp.float32)
    mu2_ref, ls2_ref = encoder_ref(x2, params, latent_dim)
    mu2, ls2 = encoder_forward(x2, prepared_f32, latent_dim=latent_dim)
    jax.block_until_ready((mu2, ls2))
    assert mu2.shape == (B2, latent_dim) and ls2.shape == (B2, latent_dim)
    assert jnp.allclose(mu2, mu2_ref, atol=1e-4, rtol=1e-4)
    assert jnp.allclose(ls2, ls2_ref, atol=1e-4, rtol=1e-4)

    # Explicit multi-step grid (block_b=128 over 260 rows -> 3 pipelined steps).
    mu3, ls3 = encoder_forward(x2, prepared_f32, latent_dim=latent_dim, block_b=128)
    jax.block_until_ready((mu3, ls3))
    assert jnp.allclose(mu3, mu2_ref, atol=1e-4, rtol=1e-4)
    assert jnp.allclose(ls3, ls2_ref, atol=1e-4, rtol=1e-4)

    print("KERNEL_OK")
</pallas_src>

<mosaic_0001>
module attributes {stable_mosaic.version = 11 : i64} {
  func.func @encoder_kernel(%arg0: i32, %arg1: memref<8x16xf32, #tpu.memory_space<vmem>>, %arg2: memref<16x128xf32, #tpu.memory_space<vmem>>, %arg3: memref<1x128xf32, #tpu.memory_space<vmem>>, %arg4: memref<128x128xf32, #tpu.memory_space<vmem>>, %arg5: memref<1x128xf32, #tpu.memory_space<vmem>>, %arg6: memref<128x8xf32, #tpu.memory_space<vmem>>, %arg7: memref<1x8xf32, #tpu.memory_space<vmem>>, %arg8: memref<8x8xf32, #tpu.memory_space<vmem>>) attributes {dimension_semantics = [#tpu.dimension_semantics<parallel>], iteration_bounds = array<i64: 1>, scalar_prefetch = 0 : i64, scratch_operands = 0 : i64, tpu.core_type = #tpu.core_type<tc>, window_params = [{transform_indices = @transform_0, window_bounds = array<i64: 8, 16>}, {pipeline_mode = #tpu.pipeline_mode<synchronous>, transform_indices = @transform_1, window_bounds = array<i64: 16, 128>}, {pipeline_mode = #tpu.pipeline_mode<synchronous>, transform_indices = @transform_2, window_bounds = array<i64: 1, 128>}, {pipeline_mode = #tpu.pipeline_mode<synchronous>, transform_indices = @transform_3, window_bounds = array<i64: 128, 128>}, {pipeline_mode = #tpu.pipeline_mode<synchronous>, transform_indices = @transform_4, window_bounds = array<i64: 1, 128>}, {pipeline_mode = #tpu.pipeline_mode<synchronous>, transform_indices = @transform_5, window_bounds = array<i64: 128, 8>}, {pipeline_mode = #tpu.pipeline_mode<synchronous>, transform_indices = @transform_6, window_bounds = array<i64: 1, 8>}, {transform_indices = @transform_7, window_bounds = array<i64: 8, 8>}]} {
    %c0 = arith.constant 0 : index
    %c0_0 = arith.constant 0 : index
    %0 = vector.load %arg1[%c0, %c0_0] : memref<8x16xf32, #tpu.memory_space<vmem>>, vector<8x16xf32>
    %c0_1 = arith.constant 0 : index
    %c0_2 = arith.constant 0 : index
    %1 = vector.load %arg2[%c0_1, %c0_2] : memref<16x128xf32, #tpu.memory_space<vmem>>, vector<16x128xf32>
    %cst = arith.constant dense<0.000000e+00> : vector<8x128xf32>
    %2 = tpu.matmul %0, %1, %cst {dimension_numbers = #tpu.dot_dimension_numbers<[1], [0], [0], [1], [0, 0, 1, 1], [], []>} : vector<8x16xf32>, vector<16x128xf32>, vector<8x128xf32> -> vector<8x128xf32>
    %c0_3 = arith.constant 0 : index
    %c0_4 = arith.constant 0 : index
    %3 = vector.load %arg3[%c0_3, %c0_4] : memref<1x128xf32, #tpu.memory_space<vmem>>, vector<1x128xf32>
    %4 = vector.broadcast %3 : vector<1x128xf32> to vector<8x128xf32>
    %5 = arith.addf %2, %4 : vector<8x128xf32>
    %6 = math.tanh %5 : vector<8x128xf32>
    %c0_5 = arith.constant 0 : index
    %c0_6 = arith.constant 0 : index
    %7 = vector.load %arg4[%c0_5, %c0_6] : memref<128x128xf32, #tpu.memory_space<vmem>>, vector<128x128xf32>
    %cst_7 = arith.constant dense<0.000000e+00> : vector<8x128xf32>
    %8 = tpu.matmul %6, %7, %cst_7 {dimension_numbers = #tpu.dot_dimension_numbers<[1], [0], [0], [1], [0, 0, 1, 1], [], []>} : vector<8x128xf32>, vector<128x128xf32>, vector<8x128xf32> -> vector<8x128xf32>
    %c0_8 = arith.constant 0 : index
    %c0_9 = arith.constant 0 : index
    %9 = vector.load %arg5[%c0_8, %c0_9] : memref<1x128xf32, #tpu.memory_space<vmem>>, vector<1x128xf32>
    %10 = vector.broadcast %9 : vector<1x128xf32> to vector<8x128xf32>
    %11 = arith.addf %8, %10 : vector<8x128xf32>
    %12 = math.tanh %11 : vector<8x128xf32>
    %c0_10 = arith.constant 0 : index
    %c0_11 = arith.constant 0 : index
    %13 = vector.load %arg6[%c0_10, %c0_11] : memref<128x8xf32, #tpu.memory_space<vmem>>, vector<128x8xf32>
    %cst_12 = arith.constant dense<0.000000e+00> : vector<8x8xf32>
    %14 = tpu.matmul %12, %13, %cst_12 {dimension_numbers = #tpu.dot_dimension_numbers<[1], [0], [0], [1], [0, 0, 1, 1], [], []>} : vector<8x128xf32>, vector<128x8xf32>, vector<8x8xf32> -> vector<8x8xf32>
    %c0_13 = arith.constant 0 : index
    %c0_14 = arith.constant 0 : index
    %15 = vector.load %arg7[%c0_13, %c0_14] : memref<1x8xf32, #tpu.memory_space<vmem>>, vector<1x8xf32>
    %16 = vector.broadcast %15 : vector<1x8xf32> to vector<8x8xf32>
    %17 = arith.addf %14, %16 : vector<8x8xf32>
    %c0_15 = arith.constant 0 : index
    %c0_16 = arith.constant 0 : index
    %18 = vector.load %arg8[%c0_15, %c0_16] : memref<8x8xf32, #tpu.memory_space<vmem>>, vector<8x8xf32>
    tpu.vector_store %arg8[%c0_15, %c0_16], %17 {strides = array<i32>} : memref<8x8xf32, #tpu.memory_space<vmem>>, vector<8x8xf32>,
    return
  }
  func.func @transform_0(%arg0: i32) -> (i32, i32) {
    %c0_i32 = arith.constant 0 : i32
    %c0_i32_0 = arith.constant 0 : i32
    return %arg0, %c0_i32 : i32, i32
  }
  func.func @transform_1(%arg0: i32) -> (i32, i32) {
    %c0_i32 = arith.constant 0 : i32
    %c0_i32_0 = arith.constant 0 : i32
    %c0_i32_1 = arith.constant 0 : i32
    return %c0_i32, %c0_i32_0 : i32, i32
  }
  func.func @transform_2(%arg0: i32) -> (i32, i32) {
    %c0_i32 = arith.constant 0 : i32
    %c0_i32_0 = arith.constant 0 : i32
    %c0_i32_1 = arith.constant 0 : i32
    return %c0_i32, %c0_i32_0 : i32, i32
  }
  func.func @transform_3(%arg0: i32) -> (i32, i32) {
    %c0_i32 = arith.constant 0 : i32
    %c0_i32_0 = arith.constant 0 : i32
    %c0_i32_1 = arith.constant 0 : i32
    return %c0_i32, %c0_i32_0 : i32, i32
  }
  func.func @transform_4(%arg0: i32) -> (i32, i32) {
    %c0_i32 = arith.constant 0 : i32
    %c0_i32_0 = arith.constant 0 : i32
    %c0_i32_1 = arith.constant 0 : i32
    return %c0_i32, %c0_i32_0 : i32, i32
  }
  func.func @transform_5(%arg0: i32) -> (i32, i32) {
    %c0_i32 = arith.constant 0 : i32
    %c0_i32_0 = arith.constant 0 : i32
    %c0_i32_1 = arith.constant 0 : i32
    return %c0_i32, %c0_i32_0 : i32, i32
  }
  func.func @transform_6(%arg0: i32) -> (i32, i32) {
    %c0_i32 = arith.constant 0 : i32
    %c0_i32_0 = arith.constant 0 : i32
    %c0_i32_1 = arith.constant 0 : i32
    return %c0_i32, %c0_i32_0 : i32, i32
  }
  func.func @transform_7(%arg0: i32) -> (i32, i32) {
    %c0_i32 = arith.constant 0 : i32
    %c0_i32_0 = arith.constant 0 : i32
    return %arg0, %c0_i32 : i32, i32
  }
}

module attributes {stable_mosaic.version = 11 : i64} {
  func.func @encoder_kernel(%arg0: i32, %arg1: memref<8x16xf32, #tpu.memory_space<vmem>>, %arg2: memref<16x128xf32, #tpu.memory_space<vmem>>, %arg3: memref<1x128xf32, #tpu.memory_space<vmem>>, %arg4: memref<128x128xf32, #tpu.memory_space<vmem>>, %arg5: memref<1x128xf32, #tpu.memory_space<vmem>>, %arg6: memref<128x8xf32, #tpu.memory_space<vmem>>, %arg7: memref<1x8xf32, #tpu.memory_space<vmem>>, %arg8: memref<8x8xf32, #tpu.memory_space<vmem>>) attributes {dimension_semantics = [#tpu.dimension_semantics<parallel>], iteration_bounds = array<i64: 1>, scalar_prefetch = 0 : i64, scratch_operands = 0 : i64, tpu.core_type = #tpu.core_type<tc>, window_params = [{transform_indices = @transform_0, window_bounds = array<i64: 8, 16>}, {pipeline_mode = #tpu.pipeline_mode<synchronous>, transform_indices = @transform_1, window_bounds = array<i64: 16, 128>}, {pipeline_mode = #tpu.pipeline_mode<synchronous>, transform_indices = @transform_2, window_bounds = array<i64: 1, 128>}, {pipeline_mode = #tpu.pipeline_mode<synchronous>, transform_indices = @transform_3, window_bounds = array<i64: 128, 128>}, {pipeline_mode = #tpu.pipeline_mode<synchronous>, transform_indices = @transform_4, window_bounds = array<i64: 1, 128>}, {pipeline_mode = #tpu.pipeline_mode<synchronous>, transform_indices = @transform_5, window_bounds = array<i64: 128, 8>}, {pipeline_mode = #tpu.pipeline_mode<synchronous>, transform_indices = @transform_6, window_bounds = array<i64: 1, 8>}, {transform_indices = @transform_7, window_bounds = array<i64: 8, 8>}]} {
    %c0 = arith.constant 0 : index
    %c0_0 = arith.constant 0 : index
    %0 = vector.load %arg1[%c0, %c0_0] : memref<8x16xf32, #tpu.memory_space<vmem>>, vector<8x16xf32>
    %c0_1 = arith.constant 0 : index
    %c0_2 = arith.constant 0 : index
    %1 = vector.load %arg2[%c0_1, %c0_2] : memref<16x128xf32, #tpu.memory_space<vmem>>, vector<16x128xf32>
    %cst = arith.constant dense<0.000000e+00> : vector<8x128xf32>
    %2 = tpu.matmul %0, %1, %cst {dimension_numbers = #tpu.dot_dimension_numbers<[1], [0], [0], [1], [0, 0, 1, 1], [], []>} : vector<8x16xf32>, vector<16x128xf32>, vector<8x128xf32> -> vector<8x128xf32>
    %c0_3 = arith.constant 0 : index
    %c0_4 = arith.constant 0 : index
    %3 = vector.load %arg3[%c0_3, %c0_4] : memref<1x128xf32, #tpu.memory_space<vmem>>, vector<1x128xf32>
    %4 = vector.broadcast %3 : vector<1x128xf32> to vector<8x128xf32>
    %5 = arith.addf %2, %4 : vector<8x128xf32>
    %6 = math.tanh %5 : vector<8x128xf32>
    %c0_5 = arith.constant 0 : index
    %c0_6 = arith.constant 0 : index
    %7 = vector.load %arg4[%c0_5, %c0_6] : memref<128x128xf32, #tpu.memory_space<vmem>>, vector<128x128xf32>
    %cst_7 = arith.constant dense<0.000000e+00> : vector<8x128xf32>
    %8 = tpu.matmul %6, %7, %cst_7 {dimension_numbers = #tpu.dot_dimension_numbers<[1], [0], [0], [1], [0, 0, 1, 1], [], []>} : vector<8x128xf32>, vector<128x128xf32>, vector<8x128xf32> -> vector<8x128xf32>
    %c0_8 = arith.constant 0 : index
    %c0_9 = arith.constant 0 : index
    %9 = vector.load %arg5[%c0_8, %c0_9] : memref<1x128xf32, #tpu.memory_space<vmem>>, vector<1x128xf32>
    %10 = vector.broadcast %9 : vector<1x128xf32> to vector<8x128xf32>
    %11 = arith.addf %8, %10 : vector<8x128xf32>
    %12 = math.tanh %11 : vector<8x128xf32>
    %c0_10 = arith.constant 0 : index
    %c0_11 = arith.constant 0 : index
    %13 = vector.load %arg6[%c0_10, %c0_11] : memref<128x8xf32, #tpu.memory_space<vmem>>, vector<128x8xf32>
    %cst_12 = arith.constant dense<0.000000e+00> : vector<8x8xf32>
    %14 = tpu.matmul %12, %13, %cst_12 {dimension_numbers = #tpu.dot_dimension_numbers<[1], [0], [0], [1], [0, 0, 1, 1], [], []>} : vector<8x128xf32>, vector<128x8xf32>, vector<8x8xf32> -> vector<8x8xf32>
    %c0_13 = arith.constant 0 : index
    %c0_14 = arith.constant 0 : index
    %15 = vector.load %arg7[%c0_13, %c0_14] : memref<1x8xf32, #tpu.memory_space<vmem>>, vector<1x8xf32>
    %16 = vector.broadcast %15 : vector<1x8xf32> to vector<8x8xf32>
    %17 = arith.addf %14, %16 : vector<8x8xf32>
    %c0_15 = arith.constant 0 : index
    %c0_16 = arith.constant 0 : index
    %18 = vector.load %arg8[%c0_15, %c0_16] : memref<8x8xf32, #tpu.memory_space<vmem>>, vector<8x8xf32>
    tpu.vector_store %arg8[%c0_15, %c0_16], %17 {strides = array<i32>} : memref<8x8xf32, #tpu.memory_space<vmem>>, vector<8x8xf32>,
    return
  }
  func.func @transform_0(%arg0: i32) -> (i32, i32) {
    %c0_i32 = arith.constant 0 : i32
    %c0_i32_0 = arith.constant 0 : i32
    return %arg0, %c0_i32 : i32, i32
  }
  func.func @transform_1(%arg0: i32) -> (i32, i32) {
    %c0_i32 = arith.constant 0 : i32
    %c0_i32_0 = arith.constant 0 : i32
    %c0_i32_1 = arith.constant 0 : i32
    return %c0_i32, %c0_i32_0 : i32, i32
  }
  func.func @transform_2(%arg0: i32) -> (i32, i32) {
    %c0_i32 = arith.constant 0 : i32
    %c0_i32_0 = arith.constant 0 : i32
    %c0_i32_1 = arith.constant 0 : i32
    return %c0_i32, %c0_i32_0 : i32, i32
  }
  func.func @transform_3(%arg0: i32) -> (i32, i32) {
    %c0_i32 = arith.constant 0 : i32
    %c0_i32_0 = arith.constant 0 : i32
    %c0_i32_1 = arith.constant 0 : i32
    return %c0_i32, %c0_i32_0 : i32, i32
  }
  func.func @transform_4(%arg0: i32) -> (i32, i32) {
    %c0_i32 = arith.constant 0 : i32
    %c0_i32_0 = arith.constant 0 : i32
    %c0_i32_1 = arith.constant 0 : i32
    return %c0_i32, %c0_i32_0 : i32, i32
  }
  func.func @transform_5(%arg0: i32) -> (i32, i32) {
    %c0_i32 = arith.constant 0 : i32
    %c0_i32_0 = arith.constant 0 : i32
    %c0_i32_1 = arith.constant 0 : i32
    return %c0_i32, %c0_i32_0 : i32, i32
  }
  func.func @transform_6(%arg0: i32) -> (i32, i32) {
    %c0_i32 = arith.constant 0 : i32
    %c0_i32_0 = arith.constant 0 : i32
    %c0_i32_1 = arith.constant 0 : i32
    return %c0_i32, %c0_i32_0 : i32, i32
  }
  func.func @transform_7(%arg0: i32) -> (i32, i32) {
    %c0_i32 = arith.constant 0 : i32
    %c0_i32_0 = arith.constant 0 : i32
    return %arg0, %c0_i32 : i32, i32
  }
}

</mosaic_0001>

<bundles_post_ra>
// kernel: tpu_custom_call.1
= control target key start
LH: loop header
LB: loop body
LE: loop exit
PB: predicated region body
PF: predicated region fallthrough
CT: control target
= control target key end

     0   :  { %12 = vsyncpa [#allocation3], 0  ;;  %s397_s0 = inlined_call_operand.vmem [shape: f32[8,16], index: 0, kind: input, shape index: {}]   ;;  %s398_s1 = inlined_call_operand.hbm [shape: f32[16,128], index: 1, kind: input, shape index: {}]   ;;  %s399_s2 = inlined_call_operand.vmem [shape: f32[1,128], index: 2, kind: input, shape index: {}]   ;;  %s400_s3 = inlined_call_operand.vmem [shape: f32[128,128], index: 3, kind: input, shape index: {}]   ;;  %s401_s4 = inlined_call_operand.vmem [shape: f32[1,128], index: 4, kind: input, shape index: {}]   ;;  %s402_s5 = inlined_call_operand.vmem [shape: f32[128,8], index: 5, kind: input, shape index: {}]   ;;  %s403_s6 = inlined_call_operand.vmem [shape: f32[1,8], index: 6, kind: input, shape index: {}]   ;;  %s404_s7 = inlined_call_operand.hbm [shape: f32[8,8], index: 7, kind: output, shape index: {}]  }
   0x1   :  { %13 = vsyncpa [#allocation4], 0  ;;  %s20_s26 = sshll.u32 %s398_s1, 4  ;;  %s239_s27 = smov [#allocation2]   ;;  %s21_s26 = int_to_ptr.hbm [resolvable:$true] %s20_s26 }
   0x2   :  { %s22_s28 = sshll.u32 %s239_s27, 4  ;;  %s240_s29 = smov 128   ;;  %s23_s28 = int_to_ptr.vmem [resolvable:$true] %s22_s28 }
   0x3   :  { %s241_s30 = smov 8  }
   0x4   :  { %28 = dma.hbm_to_vmem [thread:$0]  %s21_s26, 256, %s23_s28, [#allocation3], %s240_s29, %s240_s29, %s241_s30  }
   0x5   :  { %235 = dma.done.wait [#allocation3], 256  }
   0x6   :  { %236 = vsyncadd [#allocation3], 4294967040  ;;  %v45_v0 = vld [vmem:[#allocation2 + $0x8] sm:$0xff]  ;;  %v44_v1 = vld [vmem:[#allocation2] sm:$0xff]  ;;  %vm50_vm0 = vcmask 130048   ;;  %s242_s25 = smov [#allocation5]  }
   0x7   :  { %68 = vmatpush.msra.mxu0 %v45_v0  ;;  %v43_v2 = vld [vmem:[%s397_s0] sm:$0xff]  ;;  %v90_v3 = vld [vmem:[%s400_s3 + $0x78] sm:$0xff]  ;;  %v89_v4 = vld [vmem:[%s400_s3 + $0x70] sm:$0xff]  ;;  %s163_s26 = sshll.u32 %s242_s25, 4  ;;  %vm156_vm1 = vcmask 64512   ;;  %s164_s26 = int_to_ptr.vmem [resolvable:$true] %s163_s26 }
   0x8   :  { %95 = vmatpush.msra.mxu1 %v90_v3  ;;  %v88_v5 = vld [vmem:[%s400_s3 + $0x68] sm:$0xff]  ;;  %v87_v6 = vld [vmem:[%s400_s3 + $0x60] sm:$0xff]  ;;  %v86_v7 = vld [vmem:[%s400_s3 + $0x58] sm:$0xff] }
   0x9   :  { %69 = vmatpush.msra.mxu0 %v44_v1  ;;  %v85_v8 = vld [vmem:[%s400_s3 + $0x50] sm:$0xff]  ;;  %v84_v9 = vld [vmem:[%s400_s3 + $0x48] sm:$0xff]  ;;  %v83_v10 = vld [vmem:[%s400_s3 + $0x40] sm:$0xff] }
   0xa   :  { %175 = vmatmul.msk.f32.vlgmr.msra.gmra.mxu0 %vm50_vm0, %v43_v2  ;;  %96 = vmatpush.msra.mxu1 %v89_v4  ;;  %v82_v11 = vld [vmem:[%s400_s3 + $0x38] sm:$0xff]  ;;  %v81_v12 = vld [vmem:[%s400_s3 + $0x30] sm:$0xff]  ;;  %v80_v13 = vld [vmem:[%s400_s3 + $0x28] sm:$0xff] }
   0xb   :  { %v79_v14 = vld [vmem:[%s400_s3 + $0x20] sm:$0xff]  ;;  %v78_v15 = vld [vmem:[%s400_s3 + $0x18] sm:$0xff]  ;;  %v77_v16 = vld [vmem:[%s400_s3 + $0x10] sm:$0xff] }
   0xc   :  { %97 = vmatpush.msra.mxu1 %v88_v5  ;;  %v76_v17 = vld [vmem:[%s400_s3 + $0x8] sm:$0xff]  ;;  %v75_v18 = vld [vmem:[%s400_s3] sm:$0xff]  ;;  %v131_v19 = vld [vmem:[%s402_s5 + $0x78] sm:$0xff] }
   0xd   :  { %v130_v20 = vld [vmem:[%s402_s5 + $0x70] sm:$0xff]  ;;  %136 = vmatpush.msra.mxu2 %v131_v19  ;;  %v129_v21 = vld [vmem:[%s402_s5 + $0x68] sm:$0xff]  ;;  %v128_v22 = vld [vmem:[%s402_s5 + $0x60] sm:$0xff] }
   0xe   :  { %98 = vmatpush.msra.mxu1 %v87_v6  ;;  %v127_v23 = vld [vmem:[%s402_s5 + $0x58] sm:$0xff]  ;;  %v126_v24 = vld [vmem:[%s402_s5 + $0x50] sm:$0xff]  ;;  %v125_v25 = vld [vmem:[%s402_s5 + $0x48] sm:$0xff] }
   0xf   :  { %137 = vmatpush.msra.mxu2 %v130_v20  ;;  %v124_v26 = vld [vmem:[%s402_s5 + $0x40] sm:$0xff]  ;;  %v123_v27 = vld [vmem:[%s402_s5 + $0x38] sm:$0xff]  ;;  %v122_v28 = vld [vmem:[%s402_s5 + $0x30] sm:$0xff] }
  0x10   :  { %99 = vmatpush.msra.mxu1 %v86_v7  ;;  %v121_v29 = vld [vmem:[%s402_s5 + $0x28] sm:$0xff]  ;;  %v180_v30 = vld [vmem:[%s399_s2] ss:$0 sm:$0xff]  ;;  %v119_v35 = vld [vmem:[%s402_s5 + $0x18] sm:$0xff] }
  0x11   :  { %138 = vmatpush.msra.mxu2 %v129_v21  ;;  %v120_v34 = vld [vmem:[%s402_s5 + $0x20] sm:$0xff]  ;;  %v118_v36 = vld [vmem:[%s402_s5 + $0x10] sm:$0xff]  ;;  %v117_v37 = vld [vmem:[%s402_s5 + $0x8] sm:$0xff] }
  0x12   :  { %100 = vmatpush.msra.mxu1 %v85_v8  ;;  %v116_v38 = vld [vmem:[%s402_s5] sm:$0xff]  ;;  %s165_s5 = sshll.u32 %s404_s7, 4  ;;  %s166_s5 = int_to_ptr.hbm [resolvable:$true] %s165_s5 }
  0x13   :  { %139 = vmatpush.msra.mxu2 %v128_v22  ;;  %v181_v39 = vld [vmem:[%s401_s4] ss:$0 sm:$0xff] }
  0x14   :  { %101 = vmatpush.msra.mxu1 %v84_v9  ;;  %v182_v43 = vld [vmem:[%s403_s6] ss:$0 sm:$0xff] }
  0x15   :  { %140 = vmatpush.msra.mxu2 %v127_v23 }
  0x16   :  { %102 = vmatpush.msra.mxu1 %v83_v10 }
  0x17   :  { %141 = vmatpush.msra.mxu2 %v126_v24 }
  0x18   :  { %103 = vmatpush.msra.mxu1 %v82_v11 }
  0x19   :  { %142 = vmatpush.msra.mxu2 %v125_v25 }
  0x1a   :  { %104 = vmatpush.msra.mxu1 %v81_v12 }
  0x1b   :  { %143 = vmatpush.msra.mxu2 %v124_v26 }
  0x1c   :  { %105 = vmatpush.msra.mxu1 %v80_v13 }
  0x1d   :  { %144 = vmatpush.msra.mxu2 %v123_v27 }
  0x1e   :  { %106 = vmatpush.msra.mxu1 %v79_v14 }
  0x1f   :  { %145 = vmatpush.msra.mxu2 %v122_v28 }
  0x20   :  { %107 = vmatpush.msra.mxu1 %v78_v15 }
  0x21   :  { %146 = vmatpush.msra.mxu2 %v121_v29 }
  0x22   :  { %108 = vmatpush.msra.mxu1 %v77_v16 }
  0x23   :  { %147 = vmatpush.msra.mxu2 %v120_v34 }
  0x24   :  { %109 = vmatpush.msra.mxu1 %v76_v17 }
  0x25   :  { %148 = vmatpush.msra.mxu2 %v119_v35 }
  0x26   :  { %110 = vmatpush.msra.mxu1 %v75_v18 }
  0x27   :  { %149 = vmatpush.msra.mxu2 %v118_v36 }
  0x29   :  { %150 = vmatpush.msra.mxu2 %v117_v37 }
  0x2b   :  { %151 = vmatpush.msra.mxu2 %v116_v38 }
  0x87   :  { %v71_v31 = vpop.f32.mrf.mxu0 }
  0x88   :  { %v72_v32 = vadd.f32 %v180_v30, %v71_v31 }
  0x8a   :  { %183 = vtanh.f32 %v72_v32 }
  0x90   :  { %v184_v33 = vpop.eup %183 }
  0x91   :  { %111 = vmatmul.f32.vlgmr.msra.gmra.mxu1 %v184_v33 }
 0x10e   :  { %v112_v40 = vpop.f32.mrf.mxu1 }
 0x10f   :  { %v113_v41 = vadd.f32 %v181_v39, %v112_v40 }
 0x111   :  { %185 = vtanh.f32 %v113_v41 }
 0x117   :  { %v186_v42 = vpop.eup %185 }
 0x118   :  { %152 = vmatmul.f32.vlgmr.msra.gmra.mxu2 %v186_v42 }
 0x19b   :  { %v153_v44 = vpop.f32.mrf.mxu2 }
 0x19c   :  { %v154_v45 = vadd.f32 %v182_v43, %v153_v44 }
 0x19e   :  { %157 = vst.msk [vmem:[#allocation5] sm:$0xff] %vm156_vm1, %v154_v45 }
 0x19f   :  { %168 = dma.vmem_to_hbm [thread:$0]  %s164_s26, 128, %s166_s5, [#allocation4]  }
 0x1a0   :  { %237 = dma.done.wait [#allocation4], 128  }
 0x1a1   :  { %238 = vsyncadd [#allocation4], 4294967168 }
 0x1a2   :  { %173 = vsyncpa [#allocation3], 1 }
 0x1a3   :  { %174 = vsyncpa [#allocation4], 1 }

// kernel: tpu_custom_call.1
= control target key start
LH: loop header
LB: loop body
LE: loop exit
PB: predicated region body
PF: predicated region fallthrough
CT: control target
= control target key end

     0   :  { %12 = vsyncpa [#allocation3], 0  ;;  %s397_s0 = inlined_call_operand.vmem [shape: f32[8,16], index: 0, kind: input, shape index: {}]   ;;  %s398_s1 = inlined_call_operand.hbm [shape: f32[16,128], index: 1, kind: input, shape index: {}]   ;;  %s399_s2 = inlined_call_operand.vmem [shape: f32[1,128], index: 2, kind: input, shape index: {}]   ;;  %s400_s3 = inlined_call_operand.vmem [shape: f32[128,128], index: 3, kind: input, shape index: {}]   ;;  %s401_s4 = inlined_call_operand.vmem [shape: f32[1,128], index: 4, kind: input, shape index: {}]   ;;  %s402_s5 = inlined_call_operand.vmem [shape: f32[128,8], index: 5, kind: input, shape index: {}]   ;;  %s403_s6 = inlined_call_operand.vmem [shape: f32[1,8], index: 6, kind: input, shape index: {}]   ;;  %s404_s7 = inlined_call_operand.hbm [shape: f32[8,8], index: 7, kind: output, shape index: {}]  }
   0x1   :  { %13 = vsyncpa [#allocation4], 0  ;;  %s20_s26 = sshll.u32 %s398_s1, 4  ;;  %s239_s27 = smov [#allocation2]   ;;  %s21_s26 = int_to_ptr.hbm [resolvable:$true] %s20_s26 }
   0x2   :  { %s22_s28 = sshll.u32 %s239_s27, 4  ;;  %s240_s29 = smov 128   ;;  %s23_s28 = int_to_ptr.vmem [resolvable:$true] %s22_s28 }
   0x3   :  { %s241_s30 = smov 8  }
   0x4   :  { %28 = dma.hbm_to_vmem [thread:$0]  %s21_s26, 256, %s23_s28, [#allocation3], %s240_s29, %s240_s29, %s241_s30  }
   0x5   :  { %235 = dma.done.wait [#allocation3], 256  }
   0x6   :  { %236 = vsyncadd [#allocation3], 4294967040  ;;  %v45_v0 = vld [vmem:[#allocation2 + $0x8] sm:$0xff]  ;;  %v44_v1 = vld [vmem:[#allocation2] sm:$0xff]  ;;  %vm50_vm0 = vcmask 130048   ;;  %s242_s25 = smov [#allocation5]  }
   0x7   :  { %68 = vmatpush.msra.mxu0 %v45_v0  ;;  %v43_v2 = vld [vmem:[%s397_s0] sm:$0xff]  ;;  %v90_v3 = vld [vmem:[%s400_s3 + $0x78] sm:$0xff]  ;;  %v89_v4 = vld [vmem:[%s400_s3 + $0x70] sm:$0xff]  ;;  %s163_s26 = sshll.u32 %s242_s25, 4  ;;  %vm156_vm1 = vcmask 64512   ;;  %s164_s26 = int_to_ptr.vmem [resolvable:$true] %s163_s26 }
   0x8   :  { %95 = vmatpush.msra.mxu1 %v90_v3  ;;  %v88_v5 = vld [vmem:[%s400_s3 + $0x68] sm:$0xff]  ;;  %v87_v6 = vld [vmem:[%s400_s3 + $0x60] sm:$0xff]  ;;  %v86_v7 = vld [vmem:[%s400_s3 + $0x58] sm:$0xff] }
   0x9   :  { %69 = vmatpush.msra.mxu0 %v44_v1  ;;  %v85_v8 = vld [vmem:[%s400_s3 + $0x50] sm:$0xff]  ;;  %v84_v9 = vld [vmem:[%s400_s3 + $0x48] sm:$0xff]  ;;  %v83_v10 = vld [vmem:[%s400_s3 + $0x40] sm:$0xff] }
   0xa   :  { %175 = vmatmul.msk.f32.vlgmr.msra.gmra.mxu0 %vm50_vm0, %v43_v2  ;;  %96 = vmatpush.msra.mxu1 %v89_v4  ;;  %v82_v11 = vld [vmem:[%s400_s3 + $0x38] sm:$0xff]  ;;  %v81_v12 = vld [vmem:[%s400_s3 + $0x30] sm:$0xff]  ;;  %v80_v13 = vld [vmem:[%s400_s3 + $0x28] sm:$0xff] }
   0xb   :  { %v79_v14 = vld [vmem:[%s400_s3 + $0x20] sm:$0xff]  ;;  %v78_v15 = vld [vmem:[%s400_s3 + $0x18] sm:$0xff]  ;;  %v77_v16 = vld [vmem:[%s400_s3 + $0x10] sm:$0xff] }
   0xc   :  { %97 = vmatpush.msra.mxu1 %v88_v5  ;;  %v76_v17 = vld [vmem:[%s400_s3 + $0x8] sm:$0xff]  ;;  %v75_v18 = vld [vmem:[%s400_s3] sm:$0xff]  ;;  %v131_v19 = vld [vmem:[%s402_s5 + $0x78] sm:$0xff] }
   0xd   :  { %v130_v20 = vld [vmem:[%s402_s5 + $0x70] sm:$0xff]  ;;  %136 = vmatpush.msra.mxu2 %v131_v19  ;;  %v129_v21 = vld [vmem:[%s402_s5 + $0x68] sm:$0xff]  ;;  %v128_v22 = vld [vmem:[%s402_s5 + $0x60] sm:$0xff] }
   0xe   :  { %98 = vmatpush.msra.mxu1 %v87_v6  ;;  %v127_v23 = vld [vmem:[%s402_s5 + $0x58] sm:$0xff]  ;;  %v126_v24 = vld [vmem:[%s402_s5 + $0x50] sm:$0xff]  ;;  %v125_v25 = vld [vmem:[%s402_s5 + $0x48] sm:$0xff] }
   0xf   :  { %137 = vmatpush.msra.mxu2 %v130_v20  ;;  %v124_v26 = vld [vmem:[%s402_s5 + $0x40] sm:$0xff]  ;;  %v123_v27 = vld [vmem:[%s402_s5 + $0x38] sm:$0xff]  ;;  %v122_v28 = vld [vmem:[%s402_s5 + $0x30] sm:$0xff] }
  0x10   :  { %99 = vmatpush.msra.mxu1 %v86_v7  ;;  %v121_v29 = vld [vmem:[%s402_s5 + $0x28] sm:$0xff]  ;;  %v180_v30 = vld [vmem:[%s399_s2] ss:$0 sm:$0xff]  ;;  %v119_v35 = vld [vmem:[%s402_s5 + $0x18] sm:$0xff] }
  0x11   :  { %138 = vmatpush.msra.mxu2 %v129_v21  ;;  %v120_v34 = vld [vmem:[%s402_s5 + $0x20] sm:$0xff]  ;;  %v118_v36 = vld [vmem:[%s402_s5 + $0x10] sm:$0xff]  ;;  %v117_v37 = vld [vmem:[%s402_s5 + $0x8] sm:$0xff] }
  0x12   :  { %100 = vmatpush.msra.mxu1 %v85_v8  ;;  %v116_v38 = vld [vmem:[%s402_s5] sm:$0xff]  ;;  %s165_s5 = sshll.u32 %s404_s7, 4  ;;  %s166_s5 = int_to_ptr.hbm [resolvable:$true] %s165_s5 }
  0x13   :  { %139 = vmatpush.msra.mxu2 %v128_v22  ;;  %v181_v39 = vld [vmem:[%s401_s4] ss:$0 sm:$0xff] }
  0x14   :  { %101 = vmatpush.msra.mxu1 %v84_v9  ;;  %v182_v43 = vld [vmem:[%s403_s6] ss:$0 sm:$0xff] }
  0x15   :  { %140 = vmatpush.msra.mxu2 %v127_v23 }
  0x16   :  { %102 = vmatpush.msra.mxu1 %v83_v10 }
  0x17   :  { %141 = vmatpush.msra.mxu2 %v126_v24 }
  0x18   :  { %103 = vmatpush.msra.mxu1 %v82_v11 }
  0x19   :  { %142 = vmatpush.msra.mxu2 %v125_v25 }
  0x1a   :  { %104 = vmatpush.msra.mxu1 %v81_v12 }
  0x1b   :  { %143 = vmatpush.msra.mxu2 %v124_v26 }
  0x1c   :  { %105 = vmatpush.msra.mxu1 %v80_v13 }
  0x1d   :  { %144 = vmatpush.msra.mxu2 %v123_v27 }
  0x1e   :  { %106 = vmatpush.msra.mxu1 %v79_v14 }
  0x1f   :  { %145 = vmatpush.msra.mxu2 %v122_v28 }
  0x20   :  { %107 = vmatpush.msra.mxu1 %v78_v15 }
  0x21   :  { %146 = vmatpush.msra.mxu2 %v121_v29 }
  0x22   :  { %108 = vmatpush.msra.mxu1 %v77_v16 }
  0x23   :  { %147 = vmatpush.msra.mxu2 %v120_v34 }
  0x24   :  { %109 = vmatpush.msra.mxu1 %v76_v17 }
  0x25   :  { %148 = vmatpush.msra.mxu2 %v119_v35 }
  0x26   :  { %110 = vmatpush.msra.mxu1 %v75_v18 }
  0x27   :  { %149 = vmatpush.msra.mxu2 %v118_v36 }
  0x29   :  { %150 = vmatpush.msra.mxu2 %v117_v37 }
  0x2b   :  { %151 = vmatpush.msra.mxu2 %v116_v38 }
  0x87   :  { %v71_v31 = vpop.f32.mrf.mxu0 }
  0x88   :  { %v72_v32 = vadd.f32 %v180_v30, %v71_v31 }
  0x8a   :  { %183 = vtanh.f32 %v72_v32 }
  0x90   :  { %v184_v33 = vpop.eup %183 }
  0x91   :  { %111 = vmatmul.f32.vlgmr.msra.gmra.mxu1 %v184_v33 }
 0x10e   :  { %v112_v40 = vpop.f32.mrf.mxu1 }
 0x10f   :  { %v113_v41 = vadd.f32 %v181_v39, %v112_v40 }
 0x111   :  { %185 = vtanh.f32 %v113_v41 }
 0x117   :  { %v186_v42 = vpop.eup %185 }
 0x118   :  { %152 = vmatmul.f32.vlgmr.msra.gmra.mxu2 %v186_v42 }
 0x19b   :  { %v153_v44 = vpop.f32.mrf.mxu2 }
 0x19c   :  { %v154_v45 = vadd.f32 %v182_v43, %v153_v44 }
 0x19e   :  { %157 = vst.msk [vmem:[#allocation5] sm:$0xff] %vm156_vm1, %v154_v45 }
 0x19f   :  { %168 = dma.vmem_to_hbm [thread:$0]  %s164_s26, 128, %s166_s5, [#allocation4]  }
 0x1a0   :  { %237 = dma.done.wait [#allocation4], 128  }
 0x1a1   :  { %238 = vsyncadd [#allocation4], 4294967168 }
 0x1a2   :  { %173 = vsyncpa [#allocation3], 1 }
 0x1a3   :  { %174 = vsyncpa [#allocation4], 1 }

</bundles_post_ra>
